<compile_context>
chip_gen: v6e
topology: v6e:2x2x1
jax: 0.10.0
libtpu: 0.0.40
codegen_flags: <defaults>
</compile_context>

<pallas_src>
import numpy as np
import jax
import jax.numpy as jnp
from jax import lax
from jax.experimental import pallas as pl
from jax.experimental.pallas import tpu as pltpu

_LANES = 128
# Double-buffered per-tile working-set budget; safe on v7x (64 MiB physical,
# 32 MiB scoped default) and leaves headroom on v5e/v6e.
_VMEM_TILE_BUDGET = 20 * 1024 * 1024


def _round_up(x, m):
    return ((x + m - 1) // m) * m


def _make_gated_map_kernel(n_actual, tn, tiles_per_split, batch, needs_mask):
    """Streaming kernel for a fixed (N, TN, tiles/split, B, mask?) config."""

    def kernel(gate_ref, br_ref, x1_ref, x2_ref,      # VMEM (G,1),(G,TN),(B,TN),(B,TN)
               map_ref, psm_ref, pssq_ref):           # VMEM (1,TN),(1,1,1),(1,B,1)
        s = pl.program_id(0)
        k = pl.program_id(1)

        @pl.when(k == 0)
        def _init():
            psm_ref[...] = jnp.zeros_like(psm_ref)
            pssq_ref[...] = jnp.zeros_like(pssq_ref)

        # Full-occupancy gated sum: (G,TN)*(G,1) multiplies run lane-dense on
        # the VPU; the axis-0 (sublane) reduce goes to the otherwise-idle XLU.
        gate_col = gate_ref[...]                                       # (G, 1)
        m = jnp.sum(br_ref[...].astype(jnp.float32) * gate_col,
                    axis=0, keepdims=True)                             # (1, TN)

        # Unnormalized map tile, lane-dense store.  For a partial last tile
        # the out-of-range columns are discarded by Pallas on writeback.
        map_ref[...] = m

        # (m*x1 - m*x2)^2 == (m*(x1-x2))^2  — fold the broadcast multiplies.
        d = x1_ref[...].astype(jnp.float32) - x2_ref[...].astype(jnp.float32)
        sq = (m * d) ** 2                                              # (B, TN)

        if needs_mask:
            # Ragged tail: reads past N are undefined padding; zero them out
            # before they reach the accumulators.
            col = ((s * tiles_per_split + k) * tn
                   + lax.broadcasted_iota(jnp.int32, (1, tn), 1))
            valid = col < n_actual
            m_acc = jnp.where(valid, m, 0.0)
            sq = jnp.where(valid, sq, 0.0)
        else:
            m_acc = m

        # One cross-lane (XLU) reduce per tile into resident per-split blocks.
        tile_sm = jnp.sum(m_acc, axis=1, keepdims=True)                # (1, 1)
        tile_ssq = jnp.sum(sq, axis=1, keepdims=True)                  # (B, 1)
        psm_ref[...] = psm_ref[...] + tile_sm.reshape(1, 1, 1)
        pssq_ref[...] = pssq_ref[...] + tile_ssq.reshape(1, batch, 1)

    return kernel


def gated_map_forward(x1, x2, gate, map_array, w, b, *,
                      tn=32768, compute_dtype=jnp.float32, num_splits=2):
    """x1, x2: (B,C,H,W); gate: (G,); map_array: (G,C,H,W); w, b: (1,).

    compute_dtype controls the streamed dtype of branches/x1/x2 (f32 or bf16);
    all accumulation inside the kernel is f32.
    """
    B, C, H, W = x1.shape
    G = gate.shape[0]
    N = C * H * W

    # Tile size: multiple of 128 lanes, big enough to amortize grid-step
    # overhead, capped by the (double-buffered) VMEM budget and by N.
    itemsize = jnp.dtype(compute_dtype).itemsize
    bytes_per_col = 2 * ((G + 2 * B) * itemsize + 4)     # 2x-buffered ins + f32 map
    tn_cap = max(_LANES, (_VMEM_TILE_BUDGET // bytes_per_col) // _LANES * _LANES)
    tn = max(_LANES, min(_round_up(tn, _LANES), _round_up(N, _LANES), tn_cap))
    num_tiles = pl.cdiv(N, tn)

    # v7x megacore split of the tile stream (per-split partial accumulators,
    # combined in the wrapper).  Falls back to 1 when tiles don't divide.
    if num_splits < 1 or num_tiles % num_splits != 0:
        num_splits = 1
    tps = num_tiles // num_splits

    branches = map_array.reshape(G, N).astype(compute_dtype)
    x1f = x1.reshape(B, N).astype(compute_dtype)
    x2f = x2.reshape(B, N).astype(compute_dtype)
    gate_col = gate.reshape(G, 1).astype(jnp.float32)

    needs_mask = (N % tn) != 0
    kernel = _make_gated_map_kernel(N, tn, tps, B, needs_mask)

    map_flat, psm, pssq = pl.pallas_call(
        kernel,
        grid=(num_splits, tps),
        out_shape=(
            jax.ShapeDtypeStruct((1, N), jnp.float32),               # map
            jax.ShapeDtypeStruct((num_splits, 1, 1), jnp.float32),   # sum(m) partials
            jax.ShapeDtypeStruct((num_splits, B, 1), jnp.float32),   # sum(sq) partials
        ),
        in_specs=[
            pl.BlockSpec((G, 1), lambda s, k: (0, 0)),               # gate column
            pl.BlockSpec((G, tn), lambda s, k: (0, s * tps + k)),    # branches
            pl.BlockSpec((B, tn), lambda s, k: (0, s * tps + k)),    # x1
            pl.BlockSpec((B, tn), lambda s, k: (0, s * tps + k)),    # x2
        ],
        out_specs=(
            pl.BlockSpec((1, tn), lambda s, k: (0, s * tps + k)),    # map tiles
            pl.BlockSpec((1, 1, 1), lambda s, k: (s, 0, 0)),         # resident per split
            pl.BlockSpec((1, B, 1), lambda s, k: (s, 0, 0)),         # resident per split
        ),
        compiler_params=pltpu.CompilerParams(
            dimension_semantics=("parallel", "arbitrary"),
            vmem_limit_bytes=32 * 1024 * 1024),
    )(gate_col, branches, x1f, x2f)

    # Scalar finalize in the wrapper (a handful of flops).
    sum_m = jnp.sum(psm)                                  # scalar
    ssq = jnp.sum(pssq, axis=0)                           # (B, 1)
    n_f = jnp.float32(N)
    # diff = sum((m_norm * d)^2)/N  with  m_norm = m * N / sum_m
    #      = sum((m * d)^2) * N / sum_m^2
    diff = ssq * (n_f / (sum_m * sum_m))                  # (B, 1)
    out = diff * w.reshape(1, 1).astype(jnp.float32) + b.reshape(1, 1).astype(jnp.float32)

    # Map normalization (map / mean == map * N / sum_m): one cheap fused
    # elementwise scale; map_flat is exactly (1, N), no slice/pad pass.
    map_out = (map_flat * (n_f / sum_m)).reshape(1, C, H, W)
    return out, map_out


def reference_forward(x1, x2, gate, map_array, w, b):
    """Pure-JAX reference mirroring the PyTorch forward."""
    B, C, H, W = x1.shape
    G = gate.shape[0]
    N = C * H * W
    branches = map_array.reshape(G, N)
    x = gate.reshape(1, G) @ branches
    mp = x.reshape((1, C, H, W))
    mp = mp / mp.mean(axis=(1, 2, 3), keepdims=True)
    soi = mp * x1
    ana = mp * x2
    diff = jnp.sum((soi - ana) ** 2, axis=(1, 2, 3)) / N
    out = diff[:, None] * w[0] + b[0]
    return out, mp


if __name__ == "__main__":
    key = jax.random.PRNGKey(0)
    keys = jax.random.split(key, 12)

    # ---- Case 1: B=2, C=4, H=W=16 (N=1024), G=8 — single-tile f32 path ------
    B, C, H, W, G = 2, 4, 16, 16, 8
    x1 = jax.random.normal(keys[0], (B, C, H, W), dtype=jnp.float32)
    x2 = jax.random.normal(keys[1], (B, C, H, W), dtype=jnp.float32)
    gate = jax.random.uniform(keys[2], (G,), minval=0.5, maxval=1.5, dtype=jnp.float32)
    map_array = jax.random.uniform(keys[3], (G, C, H, W), minval=0.5, maxval=1.5,
                                   dtype=jnp.float32)
    w = jax.random.uniform(keys[4], (1,), minval=-1.0, maxval=1.0, dtype=jnp.float32)
    b = jax.random.uniform(keys[5], (1,), minval=-1.0, maxval=1.0, dtype=jnp.float32)

    out, mp = gated_map_forward(x1, x2, gate, map_array, w, b)
    jax.block_until_ready((out, mp))
    ref_out, ref_map = reference_forward(x1, x2, gate, map_array, w, b)
    np.testing.assert_allclose(np.asarray(out), np.asarray(ref_out), rtol=1e-5, atol=1e-5)
    np.testing.assert_allclose(np.asarray(mp), np.asarray(ref_map), rtol=1e-5, atol=1e-5)

    # ---- Case 2: ragged N (300, not a multiple of 128) — in-kernel masking --
    B2, C2, H2, W2, G2 = 2, 3, 10, 10, 5
    x1r = jax.random.normal(keys[6], (B2, C2, H2, W2), dtype=jnp.float32)
    x2r = jax.random.normal(keys[7], (B2, C2, H2, W2), dtype=jnp.float32)
    gate2 = jax.random.uniform(keys[2], (G2,), minval=0.5, maxval=1.5, dtype=jnp.float32)
    map2 = jax.random.uniform(keys[3], (G2, C2, H2, W2), minval=0.5, maxval=1.5,
                              dtype=jnp.float32)
    out2, mp2 = gated_map_forward(x1r, x2r, gate2, map2, w, b)
    jax.block_until_ready((out2, mp2))
    ref_out2, ref_map2 = reference_forward(x1r, x2r, gate2, map2, w, b)
    np.testing.assert_allclose(np.asarray(out2), np.asarray(ref_out2), rtol=1e-5, atol=1e-5)
    np.testing.assert_allclose(np.asarray(mp2), np.asarray(ref_map2), rtol=1e-5, atol=1e-5)

    # ---- Case 3: bf16 streaming inputs, f32 accumulation ---------------------
    # Compare against the f32 reference on bf16-rounded inputs so the tolerance
    # only covers accumulation-order differences.
    x1b = x1.astype(jnp.bfloat16).astype(jnp.float32)
    x2b = x2.astype(jnp.bfloat16).astype(jnp.float32)
    mapb = map_array.astype(jnp.bfloat16).astype(jnp.float32)
    out_bf, mp_bf = gated_map_forward(x1, x2, gate, map_array, w, b,
                                      compute_dtype=jnp.bfloat16)
    jax.block_until_ready((out_bf, mp_bf))
    ref_out_b, ref_map_b = reference_forward(x1b, x2b, gate, mapb, w, b)
    np.testing.assert_allclose(np.asarray(out_bf), np.asarray(ref_out_b), rtol=1e-3, atol=1e-3)
    np.testing.assert_allclose(np.asarray(mp_bf), np.asarray(ref_map_b), rtol=1e-3, atol=1e-3)

    # ---- Case 4: multi-tile + ragged tail + 2-way "parallel" split -----------
    # N = 2700, tn forced to 512 -> 6 tiles, split into 2 x 3 (exercises the
    # megacore path; runs serially but identically on single-core chips).
    B4, C4, H4, W4, G4 = 2, 3, 30, 30, 8
    x14 = jax.random.normal(keys[8], (B4, C4, H4, W4), dtype=jnp.float32)
    x24 = jax.random.normal(keys[9], (B4, C4, H4, W4), dtype=jnp.float32)
    gate4 = jax.random.uniform(keys[10], (G4,), minval=0.5, maxval=1.5, dtype=jnp.float32)
    map4 = jax.random.uniform(keys[11], (G4, C4, H4, W4), minval=0.5, maxval=1.5,
                              dtype=jnp.float32)
    out4, mp4 = gated_map_forward(x14, x24, gate4, map4, w, b, tn=512, num_splits=2)
    jax.block_until_ready((out4, mp4))
    ref_out4, ref_map4 = reference_forward(x14, x24, gate4, map4, w, b)
    np.testing.assert_allclose(np.asarray(out4), np.asarray(ref_out4), rtol=1e-5, atol=1e-5)
    np.testing.assert_allclose(np.asarray(mp4), np.asarray(ref_map4), rtol=1e-5, atol=1e-5)

    print("KERNEL_OK")
</pallas_src>

<mosaic_0001>
module attributes {stable_mosaic.version = 11 : i64} {
  func.func @kernel(%arg0: i32, %arg1: i32, %arg2: memref<8x1xf32, #tpu.memory_space<vmem>>, %arg3: memref<8x1024xf32, #tpu.memory_space<vmem>>, %arg4: memref<2x1024xf32, #tpu.memory_space<vmem>>, %arg5: memref<2x1024xf32, #tpu.memory_space<vmem>>, %arg6: memref<1x1024xf32, #tpu.memory_space<vmem>>, %arg7: memref<1x1x1xf32, #tpu.memory_space<vmem>>, %arg8: memref<1x2x1xf32, #tpu.memory_space<vmem>>) attributes {dimension_semantics = [#tpu.dimension_semantics<parallel>, #tpu.dimension_semantics<arbitrary>], iteration_bounds = array<i64: 1, 1>, scalar_prefetch = 0 : i64, scratch_operands = 0 : i64, tpu.core_type = #tpu.core_type<tc>, window_params = [{pipeline_mode = #tpu.pipeline_mode<synchronous>, transform_indices = @transform_0, window_bounds = array<i64: 8, 1>}, {transform_indices = @transform_1, window_bounds = array<i64: 8, 1024>}, {transform_indices = @transform_2, window_bounds = array<i64: 2, 1024>}, {transform_indices = @transform_3, window_bounds = array<i64: 2, 1024>}, {transform_indices = @transform_4, window_bounds = array<i64: 1, 1024>}, {transform_indices = @transform_5, window_bounds = array<i64: 1, 1, 1>}, {transform_indices = @transform_6, window_bounds = array<i64: 1, 2, 1>}]} {
    %c0_i32 = arith.constant 0 : i32
    %0 = arith.cmpi eq, %arg1, %c0_i32 : i32
    %1 = arith.extui %0 : i1 to i32
    %c0_i32_0 = arith.constant 0 : i32
    %2 = arith.cmpi ne, %1, %c0_i32_0 : i32
    scf.if %2 {
      %cst_24 = arith.constant 0.000000e+00 : f32
      %28 = vector.broadcast %cst_24 : f32 to vector<1x1x1xf32>
      %c0_25 = arith.constant 0 : index
      %c0_26 = arith.constant 0 : index
      %c0_27 = arith.constant 0 : index
      %29 = vector.load %arg7[%c0_25, %c0_26, %c0_27] : memref<1x1x1xf32, #tpu.memory_space<vmem>>, vector<1x1x1xf32>
      tpu.vector_store %arg7[%c0_25, %c0_26, %c0_27], %28 {strides = array<i32>} : memref<1x1x1xf32, #tpu.memory_space<vmem>>, vector<1x1x1xf32>,
      %cst_28 = arith.constant 0.000000e+00 : f32
      %30 = vector.broadcast %cst_28 : f32 to vector<1x2x1xf32>
      %c0_29 = arith.constant 0 : index
      %c0_30 = arith.constant 0 : index
      %c0_31 = arith.constant 0 : index
      %31 = vector.load %arg8[%c0_29, %c0_30, %c0_31] : memref<1x2x1xf32, #tpu.memory_space<vmem>>, vector<1x2x1xf32>
      tpu.vector_store %arg8[%c0_29, %c0_30, %c0_31], %30 {strides = array<i32>} : memref<1x2x1xf32, #tpu.memory_space<vmem>>, vector<1x2x1xf32>,
    } else {
    }
    %c0 = arith.constant 0 : index
    %c0_1 = arith.constant 0 : index
    %3 = vector.load %arg2[%c0, %c0_1] : memref<8x1xf32, #tpu.memory_space<vmem>>, vector<8x1xf32>
    %c0_2 = arith.constant 0 : index
    %c0_3 = arith.constant 0 : index
    %4 = vector.load %arg3[%c0_2, %c0_3] : memref<8x1024xf32, #tpu.memory_space<vmem>>, vector<8x1024xf32>
    %5 = vector.broadcast %3 : vector<8x1xf32> to vector<8x1024xf32>
    %6 = arith.mulf %4, %5 : vector<8x1024xf32>
    %cst = arith.constant dense<0.000000e+00> : vector<1024xf32>
    %7 = vector.multi_reduction <add>, %6, %cst [0] : vector<8x1024xf32> to vector<1024xf32>
    %8 = vector.shape_cast %7 : vector<1024xf32> to vector<1x1024xf32>
    %c0_4 = arith.constant 0 : index
    %c0_5 = arith.constant 0 : index
    %9 = vector.load %arg6[%c0_4, %c0_5] : memref<1x1024xf32, #tpu.memory_space<vmem>>, vector<1x1024xf32>
    tpu.vector_store %arg6[%c0_4, %c0_5], %8 {strides = array<i32>} : memref<1x1024xf32, #tpu.memory_space<vmem>>, vector<1x1024xf32>,
    %c0_6 = arith.constant 0 : index
    %c0_7 = arith.constant 0 : index
    %10 = vector.load %arg4[%c0_6, %c0_7] : memref<2x1024xf32, #tpu.memory_space<vmem>>, vector<2x1024xf32>
    %c0_8 = arith.constant 0 : index
    %c0_9 = arith.constant 0 : index
    %11 = vector.load %arg5[%c0_8, %c0_9] : memref<2x1024xf32, #tpu.memory_space<vmem>>, vector<2x1024xf32>
    %12 = arith.subf %10, %11 : vector<2x1024xf32>
    %13 = vector.broadcast %8 : vector<1x1024xf32> to vector<2x1024xf32>
    %14 = arith.mulf %13, %12 : vector<2x1024xf32>
    %15 = arith.mulf %14, %14 : vector<2x1024xf32>
    %cst_10 = arith.constant dense<0.000000e+00> : vector<1xf32>
    %16 = vector.multi_reduction <add>, %8, %cst_10 [1] : vector<1x1024xf32> to vector<1xf32>
    %17 = vector.shape_cast %16 : vector<1xf32> to vector<1x1xf32>
    %cst_11 = arith.constant dense<0.000000e+00> : vector<2xf32>
    %18 = vector.multi_reduction <add>, %15, %cst_11 [1] : vector<2x1024xf32> to vector<2xf32>
    %19 = vector.shape_cast %18 : vector<2xf32> to vector<2x1xf32>
    %c0_12 = arith.constant 0 : index
    %c0_13 = arith.constant 0 : index
    %c0_14 = arith.constant 0 : index
    %20 = vector.load %arg7[%c0_12, %c0_13, %c0_14] : memref<1x1x1xf32, #tpu.memory_space<vmem>>, vector<1x1x1xf32>
    %21 = vector.shape_cast %17 : vector<1x1xf32> to vector<1x1x1xf32>
    %22 = arith.addf %20, %21 : vector<1x1x1xf32>
    %c0_15 = arith.constant 0 : index
    %c0_16 = arith.constant 0 : index
    %c0_17 = arith.constant 0 : index
    %23 = vector.load %arg7[%c0_15, %c0_16, %c0_17] : memref<1x1x1xf32, #tpu.memory_space<vmem>>, vector<1x1x1xf32>
    tpu.vector_store %arg7[%c0_15, %c0_16, %c0_17], %22 {strides = array<i32>} : memref<1x1x1xf32, #tpu.memory_space<vmem>>, vector<1x1x1xf32>,
    %c0_18 = arith.constant 0 : index
    %c0_19 = arith.constant 0 : index
    %c0_20 = arith.constant 0 : index
    %24 = vector.load %arg8[%c0_18, %c0_19, %c0_20] : memref<1x2x1xf32, #tpu.memory_space<vmem>>, vector<1x2x1xf32>
    %25 = vector.shape_cast %19 : vector<2x1xf32> to vector<1x2x1xf32>
    %26 = arith.addf %24, %25 : vector<1x2x1xf32>
    %c0_21 = arith.constant 0 : index
    %c0_22 = arith.constant 0 : index
    %c0_23 = arith.constant 0 : index
    %27 = vector.load %arg8[%c0_21, %c0_22, %c0_23] : memref<1x2x1xf32, #tpu.memory_space<vmem>>, vector<1x2x1xf32>
    tpu.vector_store %arg8[%c0_21, %c0_22, %c0_23], %26 {strides = array<i32>} : memref<1x2x1xf32, #tpu.memory_space<vmem>>, vector<1x2x1xf32>,
    return
  }
  func.func @transform_0(%arg0: i32, %arg1: i32) -> (i32, i32) {
    %c0_i32 = arith.constant 0 : i32
    %c0_i32_0 = arith.constant 0 : i32
    %c0_i32_1 = arith.constant 0 : i32
    return %c0_i32, %c0_i32_0 : i32, i32
  }
  func.func @transform_1(%arg0: i32, %arg1: i32) -> (i32, i32) {
    %c1_i32 = arith.constant 1 : i32
    %0 = arith.muli %arg0, %c1_i32 : i32
    %1 = arith.addi %0, %arg1 : i32
    %c0_i32 = arith.constant 0 : i32
    %c0_i32_0 = arith.constant 0 : i32
    return %c0_i32, %1 : i32, i32
  }
  func.func @transform_2(%arg0: i32, %arg1: i32) -> (i32, i32) {
    %c1_i32 = arith.constant 1 : i32
    %0 = arith.muli %arg0, %c1_i32 : i32
    %1 = arith.addi %0, %arg1 : i32
    %c0_i32 = arith.constant 0 : i32
    %c0_i32_0 = arith.constant 0 : i32
    return %c0_i32, %1 : i32, i32
  }
  func.func @transform_3(%arg0: i32, %arg1: i32) -> (i32, i32) {
    %c1_i32 = arith.constant 1 : i32
    %0 = arith.muli %arg0, %c1_i32 : i32
    %1 = arith.addi %0, %arg1 : i32
    %c0_i32 = arith.constant 0 : i32
    %c0_i32_0 = arith.constant 0 : i32
    return %c0_i32, %1 : i32, i32
  }
  func.func @transform_4(%arg0: i32, %arg1: i32) -> (i32, i32) {
    %c1_i32 = arith.constant 1 : i32
    %0 = arith.muli %arg0, %c1_i32 : i32
    %1 = arith.addi %0, %arg1 : i32
    %c0_i32 = arith.constant 0 : i32
    %c0_i32_0 = arith.constant 0 : i32
    return %c0_i32, %1 : i32, i32
  }
  func.func @transform_5(%arg0: i32, %arg1: i32) -> (i32, i32, i32) {
    %c0_i32 = arith.constant 0 : i32
    %c0_i32_0 = arith.constant 0 : i32
    %c0_i32_1 = arith.constant 0 : i32
    return %arg0, %c0_i32, %c0_i32_0 : i32, i32, i32
  }
  func.func @transform_6(%arg0: i32, %arg1: i32) -> (i32, i32, i32) {
    %c0_i32 = arith.constant 0 : i32
    %c0_i32_0 = arith.constant 0 : i32
    %c0_i32_1 = arith.constant 0 : i32
    return %arg0, %c0_i32, %c0_i32_0 : i32, i32, i32
  }
}

</mosaic_0001>

<bundles_post_ra>
// kernel: tpu_custom_call.1
= control target key start
LH: loop header
LB: loop body
LE: loop exit
PB: predicated region body
PF: predicated region fallthrough
CT: control target
= control target key end

     0   :  { %12 = vsyncpa [#allocation3], 0  ;;  %s586_s0 = inlined_call_operand.vmem [shape: f32[8,1], index: 0, kind: input, shape index: {}]   ;;  %s587_s1 = inlined_call_operand.hbm [shape: f32[8,1024], index: 1, kind: input, shape index: {}]   ;;  %s588_s2 = inlined_call_operand.hbm [shape: f32[2,1024], index: 2, kind: input, shape index: {}]   ;;  %s589_s3 = inlined_call_operand.hbm [shape: f32[2,1024], index: 3, kind: input, shape index: {}]   ;;  %s590_s4 = inlined_call_operand.hbm [shape: f32[1,1024], index: 4, kind: output, shape index: {0}]   ;;  %s591_s5 = inlined_call_operand.hbm [shape: f32[1,1,1], index: 5, kind: output, shape index: {1}]   ;;  %s592_s6 = inlined_call_operand.vmem [shape: f32[1,2,1], index: 6, kind: output, shape index: {2}]  }
   0x1   :  { %13 = vsyncpa [#allocation6], 0 }
   0x2   :  { %14 = vsyncpa [#allocation4], 0 }
   0x3   :  { %15 = vsyncpa [#allocation10], 0  ;;  %s471_s21 = smov [#allocation5]   ;;  %s472_s23 = smov [#allocation2]  }
   0x4   :  { %s42_s22 = sshll.u32 %s471_s21, 4  ;;  %s28_s24 = sshll.u32 %s472_s23, 4  ;;  %s43_s22 = int_to_ptr.vmem [resolvable:$true] %s42_s22  ;;  %s29_s24 = int_to_ptr.vmem [resolvable:$true] %s28_s24 }
   0x5   :  { %s371_s25 = scalar_lea.vmem %s43_s22, 256  ;;  %p376_p1 = scmp.lt.s32.totalorder %s43_s22, %s43_s22 }
   0x6   :  { %p372_p0 = scmp.ne.s32.totalorder %s43_s22, %s371_s25  ;;  %p377_p2 = scmp.lt.s32.totalorder %s371_s25, %s371_s25 }
   0x8   :  { %p378_p3 = por %p377_p2, %p376_p1 }
   0xa   :  { %p379_p4 = pnand %p378_p3, %p372_p0 }
   0xc   :  { %382 = shalt.err (!%p379_p4)
}
   0xd   :  { %45 = dma.hbm_to_vmem [thread:$0]  %s588_s2, 256, %s43_s22, [#allocation6]  }
   0xe   :  { %s391_s28 = scalar_lea.vmem %s29_s24, 1024  ;;  %p396_p6 = scmp.lt.s32.totalorder %s29_s24, %s29_s24 }
   0xf   :  { %p392_p5 = scmp.ne.s32.totalorder %s29_s24, %s391_s28  ;;  %p397_p7 = scmp.lt.s32.totalorder %s391_s28, %s391_s28 }
  0x11   :  { %p398_p8 = por %p397_p7, %p396_p6 }
  0x13   :  { %p399_p9 = pnand %p398_p8, %p392_p5 }
  0x15   :  { %402 = shalt.err (!%p399_p9)
}
  0x16   :  { %31 = dma.hbm_to_vmem [thread:$0]  %s587_s1, 1024, %s29_s24, [#allocation3]  }
  0x17   :  { %s473_s7 = smov [#allocation7]  }
  0x18   :  { %s56_s8 = sshll.u32 %s473_s7, 4  ;;  %s57_s8 = int_to_ptr.vmem [resolvable:$true] %s56_s8 }
  0x19   :  { %s411_s9 = scalar_lea.vmem %s57_s8, 256  ;;  %p416_p11 = scmp.lt.s32.totalorder %s57_s8, %s57_s8 }
  0x1a   :  { %p412_p10 = scmp.ne.s32.totalorder %s57_s8, %s411_s9  ;;  %p417_p12 = scmp.lt.s32.totalorder %s411_s9, %s411_s9 }
  0x1c   :  { %p418_p13 = por %p417_p12, %p416_p11 }
  0x1e   :  { %p419_p0 = pnand %p418_p13, %p412_p10 }
  0x20   :  { %422 = shalt.err (!%p419_p0)
}
  0x21   :  { %59 = dma.hbm_to_vmem [thread:$0]  %s589_s3, 256, %s57_s8, [#allocation6]  }
  0x22   :  { %463 = dma.done.wait [#allocation3], 1024  }
  0x23   :  { %464 = vsyncadd [#allocation3], 4294966272 }
  0x24   :  { %465 = dma.done.wait [#allocation6], 512  }
  0x25   :  { %466 = vsyncadd [#allocation6], 4294966784  ;;  %v474_v0 = vmov 0   ;;  %v85_v1 = vld [vmem:[%s586_s0] sm:$0xff]  ;;  %vm81_vm0 = vcmask 0   ;;  %v475_v2 = vmov 0.0   ;;  %v170_v3 = vlaneseq }
  0x26   :  { %362 = vset.pattern.permute.xlu0 %v474_v0  ;;  %82 = vst.msk [vmem:[#allocation9] sm:$0x1] %vm81_vm0, %v475_v2  ;;  %v476_v4 = vmov 1983009808   ;;  %v214_v6 = vld [vmem:[#allocation5] sm:$0xff]  ;;  %v216_v7 = vld [vmem:[#allocation7] sm:$0xff] }
  0x27   :  { %96 = vperm.xlu0 %362, %v85_v1   ;;  %v224_v5 = vunpack.c.l.s4 %v476_v4  ;;  %v529_v8 = vshrl.u32 %v170_v3, 7  ;;  %v218_v9 = vsub.f32 %v214_v6, %v216_v7  ;;  %v215_v11 = vld [vmem:[#allocation5 + $0x8] sm:$0xff]  ;;  %v217_v12 = vld [vmem:[#allocation7 + $0x8] sm:$0xff]  ;;  %v86_v19 = vld [vmem:[#allocation2] sm:$0xff]  ;;  %v477_v27 = vmov 1966171168  }
  0x28   :  { %v219_v13 = vsub.f32 %v215_v11, %v217_v12  ;;  %v87_v20 = vld [vmem:[#allocation2 + $0x8] sm:$0xff]  ;;  %v88_v21 = vld [vmem:[#allocation2 + $0x10] sm:$0xff]  ;;  %v89_v22 = vld [vmem:[#allocation2 + $0x18] sm:$0xff]  ;;  %v536_v28 = vunpack.c.l.s4 %v477_v27  ;;  %vm289_vm1 = vcmask 1041408   ;;  %vm83_vm2 = vcmask 1024   ;;  %s478_s12 = smov [#allocation8]  }
  0x29   :  { %v225_v10 = vunpack.c.0.s8 %v224_v5  ;;  %v222_v14 = vcombine.high %v218_v9, %v218_v9  ;;  %v90_v23 = vld [vmem:[#allocation2 + $0x20] sm:$0xff]  ;;  %v91_v24 = vld [vmem:[#allocation2 + $0x28] sm:$0xff]  ;;  %v92_v25 = vld [vmem:[#allocation2 + $0x30] sm:$0xff]  ;;  %84 = vst.msk [vmem:[%s592_s6] sm:$0x3] %vm83_vm2, %v475_v2  ;;  %s325_s13 = sshll.u32 %s478_s12, 4  ;;  %s326_s13 = int_to_ptr.vmem [resolvable:$true] %s325_s13 }
  0x2a   :  { %v239_v18 = vcombine.high %v219_v13, %v219_v13  ;;  %v93_v26 = vld [vmem:[#allocation2 + $0x38] sm:$0xff]  ;;  %s423_s14 = scalar_lea.vmem %s326_s13, 128  ;;  %p428_p2 = scmp.lt.s32.totalorder %s326_s13, %s326_s13 }
  0x2b   :  { %v228_v15 = vsub.s32 %v225_v10, %v529_v8  ;;  %p424_p1 = scmp.ne.s32.totalorder %s326_s13, %s423_s14  ;;  %p429_p3 = scmp.lt.s32.totalorder %s423_s14, %s423_s14 }
  0x2d   :  { %v532_v16 = vrot.slane %v218_v9, %v228_v15  ;;  %v534_v17 = vrot.slane %v222_v14, %v228_v15  ;;  %v542_v32 = vrot.slane %v219_v13, %v228_v15  ;;  %v544_v33 = vrot.slane %v239_v18, %v228_v15  ;;  %p430_p4 = por %p429_p3, %p428_p2 }
  0x2f   :  { %v237_v30 = vcombine.high %v532_v16, %v532_v16  ;;  %v238_v31 = vcombine.high %v534_v17, %v534_v17  ;;  %p431_p5 = pnand %p430_p4, %p424_p1 }
  0xa2   :  { %v97_v29 = vpop.permute.xlu0 %96 }
  0xa3   :  { %v99_v34 = vmul.f32 %v97_v29, %v86_v19  ;;  %v100_v35 = vmul.f32 %v97_v29, %v87_v20  ;;  %v101_v36 = vmul.f32 %v97_v29, %v88_v21  ;;  %v102_v37 = vmul.f32 %v97_v29, %v89_v22 }
  0xa4   :  { %v103_v38 = vmul.f32 %v97_v29, %v90_v23  ;;  %v104_v39 = vmul.f32 %v97_v29, %v91_v24  ;;  %v105_v40 = vmul.f32 %v97_v29, %v92_v25  ;;  %v106_v41 = vmul.f32 %v97_v29, %v93_v26 }
  0xa5   :  { %v107_v42 = vrot.slane %v99_v34, 4  ;;  %v113_v43 = vrot.slane %v100_v35, 4  ;;  %v119_v44 = vrot.slane %v101_v36, 4  ;;  %v125_v45 = vrot.slane %v102_v37, 4 }
  0xa6   :  { %v131_v46 = vrot.slane %v103_v38, 4  ;;  %v137_v47 = vrot.slane %v104_v39, 4  ;;  %v143_v48 = vrot.slane %v105_v40, 4  ;;  %v149_v49 = vrot.slane %v106_v41, 4 }
  0xa7   :  { %v108_v50 = vadd.f32 %v107_v42, %v99_v34  ;;  %v114_v51 = vadd.f32 %v113_v43, %v100_v35  ;;  %v120_v52 = vadd.f32 %v119_v44, %v101_v36  ;;  %v126_v53 = vadd.f32 %v125_v45, %v102_v37 }
  0xa8   :  { %v132_v54 = vadd.f32 %v131_v46, %v103_v38  ;;  %v138_v55 = vadd.f32 %v137_v47, %v104_v39  ;;  %v144_v56 = vadd.f32 %v143_v48, %v105_v40  ;;  %v150_v57 = vadd.f32 %v149_v49, %v106_v41 }
  0xa9   :  { %v109_v58 = vrot.slane %v108_v50, 2  ;;  %v115_v59 = vrot.slane %v114_v51, 2  ;;  %v121_v60 = vrot.slane %v120_v52, 2  ;;  %v127_v61 = vrot.slane %v126_v53, 2 }
  0xaa   :  { %v133_v62 = vrot.slane %v132_v54, 2  ;;  %v139_v63 = vrot.slane %v138_v55, 2  ;;  %v145_v0 = vrot.slane %v144_v56, 2  ;;  %v151_v1 = vrot.slane %v150_v57, 2 }
  0xab   :  { %v110_v3 = vadd.f32 %v109_v58, %v108_v50  ;;  %v116_v4 = vadd.f32 %v115_v59, %v114_v51  ;;  %v122_v5 = vadd.f32 %v121_v60, %v120_v52  ;;  %v128_v6 = vadd.f32 %v127_v61, %v126_v53 }
  0xac   :  { %v134_v7 = vadd.f32 %v133_v62, %v132_v54  ;;  %v140_v9 = vadd.f32 %v139_v63, %v138_v55  ;;  %v146_v10 = vadd.f32 %v145_v0, %v144_v56  ;;  %v152_v11 = vadd.f32 %v151_v1, %v150_v57 }
  0xad   :  { %v111_v12 = vrot.slane %v110_v3, 1  ;;  %v117_v13 = vrot.slane %v116_v4, 1  ;;  %v123_v14 = vrot.slane %v122_v5, 1  ;;  %v129_v15 = vrot.slane %v128_v6, 1 }
  0xae   :  { %v135_v18 = vrot.slane %v134_v7, 1  ;;  %v141_v19 = vrot.slane %v140_v9, 1  ;;  %v147_v20 = vrot.slane %v146_v10, 1  ;;  %v153_v21 = vrot.slane %v152_v11, 1 }
  0xaf   :  { %v112_v22 = vadd.f32 %v111_v12, %v110_v3  ;;  %v118_v23 = vadd.f32 %v117_v13, %v116_v4  ;;  %v124_v24 = vadd.f32 %v123_v14, %v122_v5  ;;  %v130_v25 = vadd.f32 %v129_v15, %v128_v6 }
  0xb0   :  { %v136_v26 = vadd.f32 %v135_v18, %v134_v7  ;;  %v148_v27 = vadd.f32 %v147_v20, %v146_v10  ;;  %v154_v29 = vadd.f32 %v153_v21, %v152_v11  ;;  %v169_v34 = vunpack.c.0.s8 %v536_v28 }
  0xb1   :  { %v280_v35 = vadd.f32 %v118_v23, %v112_v22  ;;  %v264_v36 = vmul.f32 %v532_v16, %v112_v22  ;;  %v265_v37 = vmul.f32 %v237_v30, %v118_v23  ;;  %v266_v38 = vmul.f32 %v534_v17, %v124_v24 }
  0xb2   :  { %v142_v39 = vadd.f32 %v141_v19, %v140_v9  ;;  %v254_v40 = vcombine.high %v542_v32, %v542_v32  ;;  %v267_v41 = vmul.f32 %v238_v31, %v130_v25  ;;  %v255_v43 = vcombine.high %v544_v33, %v544_v33 }
  0xb3   :  { %v281_v42 = vadd.f32 %v280_v35, %v124_v24  ;;  %v272_v44 = vmul.f32 %v264_v36, %v264_v36  ;;  %v268_v28 = vmul.f32 %v542_v32, %v136_v26  ;;  %v273_v16 = vmul.f32 %v265_v37, %v265_v37 }
  0xb4   :  { %v274_v30 = vmul.f32 %v266_v38, %v266_v38  ;;  %v166_v45 = vcombine.low %v148_v27, %v154_v29  ;;  %v172_v47 = vsub.s32 %v169_v34, %v529_v8  ;;  %v269_v48 = vmul.f32 %v254_v40, %v142_v39 }
  0xb5   :  { %v282_v46 = vadd.f32 %v281_v42, %v130_v25  ;;  %v275_v49 = vmul.f32 %v267_v41, %v267_v41  ;;  %v290_v50 = vsel %vm289_vm1, %v272_v44, 0.0  ;;  %v291_v17 = vsel %vm289_vm1, %v273_v16, 0.0 }
  0xb6   :  { %v270_v51 = vmul.f32 %v544_v33, %v148_v27  ;;  %v271_v52 = vmul.f32 %v255_v43, %v154_v29  ;;  %v292_v53 = vadd.f32 %v291_v17, %v290_v50  ;;  %v276_v54 = vmul.f32 %v268_v28, %v268_v28 }
  0xb7   :  { %v283_v31 = vadd.f32 %v282_v46, %v136_v26  ;;  %v293_v32 = vsel %vm289_vm1, %v274_v30, 0.0  ;;  %v163_v55 = vcombine.low %v112_v22, %v118_v23  ;;  %v164_v56 = vcombine.low %v124_v24, %v130_v25 }
  0xb8   :  { %v294_v58 = vadd.f32 %v293_v32, %v292_v53  ;;  %v165_v59 = vcombine.low %v136_v26, %v142_v39  ;;  %v194_v8 = vrot.slane %v166_v45, %v172_v47  ;;  %v277_v60 = vmul.f32 %v269_v48, %v269_v48 }
  0xb9   :  { %v284_v57 = vadd.f32 %v283_v31, %v142_v39  ;;  %v295_v61 = vsel %vm289_vm1, %v275_v49, 0.0  ;;  %v173_v62 = vrot.slane %v163_v55, %v172_v47  ;;  %v180_v63 = vrot.slane %v164_v56, %v172_v47 }
  0xba   :  { %v296_v1 = vadd.f32 %v295_v61, %v294_v58  ;;  %v187_v3 = vrot.slane %v165_v59, %v172_v47  ;;  %v278_v33 = vmul.f32 %v270_v51, %v270_v51  ;;  %v297_v4 = vsel %vm289_vm1, %v276_v54, 0.0 }
  0xbb   :  { %v285_v0 = vadd.f32 %v284_v57, %v148_v27  ;;  %v195_v5 = vcombine.low %v173_v62, %v180_v63  ;;  %v279_v10 = vmul.f32 %v271_v52, %v271_v52  ;;  %v299_v11 = vsel %vm289_vm1, %v277_v60, 0.0 }
  0xbc   :  { %v298_v7 = vadd.f32 %v297_v4, %v296_v1  ;;  %v196_v9 = vcombine.low %v187_v3, %v194_v8  ;;  %v301_v15 = vsel %vm289_vm1, %v278_v33, 0.0 }
  0xbd   :  { %v286_v6 = vadd.f32 %v285_v0, %v154_v29  ;;  %v203_v12 = vrot.slane %v195_v5, %v172_v47  ;;  %v303_v20 = vsel %vm289_vm1, %v279_v10, 0.0 }
  0xbe   :  { %v300_v13 = vadd.f32 %v299_v11, %v298_v7  ;;  %v210_v14 = vrot.slane %v196_v9, %v172_v47 }
  0xbf   :  { %287 = vadd.xlane.f32.xlu0 %v286_v6 }
  0xc0   :  { %v302_v18 = vadd.f32 %v301_v15, %v300_v13  ;;  %v211_v19 = vcombine.low %v203_v12, %v210_v14 }
  0xc2   :  { %v304_v21 = vadd.f32 %v303_v20, %v302_v18  ;;  %213 = vst [vmem:[#allocation8] sm:$0xff] %v211_v19 }
  0xc4   :  { %305 = vadd.xlane.f32.xlu1 %v304_v21 }
  0xc5   :  { %434 = shalt.err (!%p431_p5)
}
  0xc6   :  { %328 = dma.vmem_to_hbm [thread:$0]  %s326_s13, 128, %s590_s4, [#allocation4]   ;;  %v307_v22 = vld [vmem:[#allocation9] sm:$0x1]  ;;  %v311_v2 = vld [vmem:[%s592_s6] sm:$0x3] }
  0xc7   :  { %s479_s17 = smov [#allocation9]  }
  0xc8   :  { %s335_s18 = sshll.u32 %s479_s17, 4  ;;  %s336_s18 = int_to_ptr.vmem [resolvable:$true] %s335_s18 }
  0xc9   :  { %s443_s21 = scalar_lea.vmem %s336_s18, 16  ;;  %s447_s22 = scalar_lea.vmem %s336_s18, 32 }
  0xca   :  { %p444_p6 = scmp.ne.s32.totalorder %s336_s18, %s443_s21  ;;  %p448_p7 = scmp.lt.s32.totalorder %s336_s18, %s336_s18 }
  0xcb   :  { %p449_p8 = scmp.lt.s32.totalorder %s447_s22, %s443_s21 }
  0xcd   :  { %p450_p9 = por %p449_p8, %p448_p7 }
  0xcf   :  { %p451_p10 = pnand %p450_p9, %p444_p6 }
 0x148   :  { %v288_v23 = vpop.xlane.xlu0 %287 }
 0x149   :  { %v308_v24 = vadd.f32 %v307_v22, %v288_v23 }
 0x14b   :  { %310 = vst.msk [vmem:[#allocation9] sm:$0x1] %vm81_vm0, %v308_v24 }
 0x14c   :  { %454 = shalt.err (!%p451_p10)
}
 0x14d   :  { %338 = dma.vmem_to_hbm [thread:$0]  %s336_s18, 16, %s591_s5, [#allocation10]   ;;  %v306_v25 = vpop.xlane.xlu1 %305 }
 0x14e   :  { %v312_v26 = vadd.f32 %v311_v2, %v306_v25 }
 0x150   :  { %314 = vst.msk [vmem:[%s592_s6] sm:$0x3] %vm83_vm2, %v312_v26 }
 0x151   :  { %467 = dma.done.wait [#allocation4], 128  }
 0x152   :  { %468 = vsyncadd [#allocation4], 4294967168 }
 0x153   :  { %469 = dma.done.wait [#allocation10], 16  }
 0x154   :  { %470 = vsyncadd [#allocation10], 4294967280 }
 0x155   :  { %349 = vsyncpa [#allocation3], 1 }
 0x156   :  { %350 = vsyncpa [#allocation6], 1 }
 0x157   :  { %351 = vsyncpa [#allocation4], 1 }
 0x158   :  { %352 = vsyncpa [#allocation10], 1 }

</bundles_post_ra>
